<compile_context>
chip_gen: v7x
topology: tpu7x:2x2x1
jax: 0.10.0
libtpu: 0.0.40
codegen_flags: <defaults>
</compile_context>

<pallas_src>
import jax
import jax.numpy as jnp
from jax import lax
from jax.experimental import pallas as pl
from jax.experimental.pallas import tpu as pltpu


def _round_up(n, m):
    return ((n + m - 1) // m) * m


_VMEM_WORKSET_BUDGET = 40 * 1024 * 1024   # keep headroom under v7x's 64 MiB physical VMEM
_VMEM_LIMIT_BYTES = 48 * 1024 * 1024      # raise v5e (16 MiB) / v7x (32 MiB) default scoped limit


def _pick_block_b(batch, d_in, hp):
    """Largest batch tile (multiple of 8, <=512) whose working set fits the VMEM budget."""
    tb = min(512, _round_up(max(batch, 1), 8))
    while tb > 8:
        need = (2 * tb * d_in * 4        # double-buffered f32 x tiles
                + 2 * d_in * hp * 2      # resident bf16 W1 (worst case 2 buffers)
                + tb * hp * 4            # f32 hidden activations
                + 4 * hp * 4             # b1 / w2 rows (double-buffered)
                + 2 * tb * 4)            # output tiles
        if need <= _VMEM_WORKSET_BUDGET:
            break
        tb = max(8, tb // 2)
    return tb


def _discriminator_kernel(x_ref, w1_ref, b1_ref, w2_ref, b2_ref, o_ref):
    """One batch tile.

    x_ref  : (TB, D_in)  f32   -- batch tile of inputs (unpadded feature dim)
    w1_ref : (D_in, Hp)  bf16  -- W1 with hidden dim zero-padded, resident
    b1_ref : (1, Hp)     f32   -- first-layer bias row (zero in padding)
    w2_ref : (1, Hp)     f32   -- second-layer weights as a row (zero in padding)
    b2_ref : (1,)        f32   -- scalar bias in SMEM
    o_ref  : (TB, 1)     f32   -- per-row probability
    """
    x = x_ref[...].astype(jnp.bfloat16)                 # cast on VPU, feed MXU in bf16
    h = lax.dot_general(                                # (TB, Hp) = x @ W1, MXU-native A@B
        x, w1_ref[...],
        dimension_numbers=(((1,), (0,)), ((), ())),
        preferred_element_type=jnp.float32,
    )
    h = h + b1_ref[...]                                 # f32 bias, sublane-broadcast
    h = jnp.maximum(h, 0.2 * h)                         # LeakyReLU(0.2): 1 mul + 1 max on VPU

    # Linear(H, 1): VPU multiply by the w2 row + lane reduce (XLU).  Padded
    # hidden lanes have w2 == 0 so they contribute nothing.
    logit = jnp.sum(h * w2_ref[...], axis=1, keepdims=True) + b2_ref[0]   # (TB, 1)
    o_ref[...] = jax.nn.sigmoid(logit).astype(o_ref.dtype)               # EUP exp + VPU


def discriminator_forward(x, w1, b1, w2, b2, *, block_b=None):
    """x: (B, input_dim) f32. Returns (B, 1) f32 probabilities."""
    B, D_in = x.shape
    H = w1.shape[1]
    assert w1.shape == (D_in, H)
    assert b1.shape == (1, H)
    assert w2.shape == (H, 1)
    assert b2.shape == (1, 1)

    Hp = _round_up(H, 256)                 # dense 2x256x256 MXU passes on v6e/v7x
    if block_b is None:
        block_b = _pick_block_b(B, D_in, Hp)
    grid = (pl.cdiv(B, block_b),)          # ragged last block overhangs; no batch padding

    # Only the tiny weight-side operands are padded/cast in the wrapper.
    # Zero padding keeps the math exact: padded W1 columns / b1 / w2 entries
    # contribute 0 to the hidden activations and to the logit.
    w1_p = jnp.zeros((D_in, Hp), jnp.bfloat16).at[:, :H].set(w1.astype(jnp.bfloat16))
    b1_p = jnp.zeros((1, Hp), jnp.float32).at[0, :H].set(b1.reshape(-1).astype(jnp.float32))
    w2_p = jnp.zeros((1, Hp), jnp.float32).at[0, :H].set(w2.reshape(-1).astype(jnp.float32))
    b2_s = jnp.asarray(b2, jnp.float32).reshape((1,))

    out = pl.pallas_call(
        _discriminator_kernel,
        out_shape=jax.ShapeDtypeStruct((B, 1), jnp.float32),
        grid_spec=pltpu.PrefetchScalarGridSpec(
            num_scalar_prefetch=0,
            grid=grid,
            in_specs=[
                pl.BlockSpec((block_b, D_in), lambda i: (i, 0)),   # x batch tile (f32, unpadded)
                pl.BlockSpec((D_in, Hp), lambda i: (0, 0)),        # W1 resident
                pl.BlockSpec((1, Hp), lambda i: (0, 0)),           # b1 resident
                pl.BlockSpec((1, Hp), lambda i: (0, 0)),           # w2 row resident
                pl.BlockSpec(memory_space=pltpu.MemorySpace.SMEM),  # b2 scalar
            ],
            out_specs=pl.BlockSpec((block_b, 1), lambda i: (i, 0)),
        ),
        compiler_params=pltpu.CompilerParams(
            dimension_semantics=("parallel",),      # independent batch tiles
            vmem_limit_bytes=_VMEM_LIMIT_BYTES,
        ),
    )(x.astype(jnp.float32), w1_p, b1_p, w2_p, b2_s)

    return out


def init_params(key, input_dim, hidden_dim):
    """Deterministic synthetic parameters (PyTorch nn.Linear-style uniform init)."""
    k1, k2, k3, k4 = jax.random.split(key, 4)
    lim1 = 1.0 / (input_dim ** 0.5)
    lim2 = 1.0 / (hidden_dim ** 0.5)
    w1 = jax.random.uniform(k1, (input_dim, hidden_dim), jnp.float32, -lim1, lim1)
    b1 = jax.random.uniform(k2, (1, hidden_dim), jnp.float32, -lim1, lim1)
    w2 = jax.random.uniform(k3, (hidden_dim, 1), jnp.float32, -lim2, lim2)
    b2 = jax.random.uniform(k4, (1, 1), jnp.float32, -lim2, lim2)
    return w1, b1, w2, b2


if __name__ == "__main__":
    batch = 8
    input_dim = 16
    hidden_dim = 32

    key = jax.random.PRNGKey(0)
    kx, kp = jax.random.split(key)
    x = jax.random.normal(kx, (batch, input_dim), jnp.float32)
    w1, b1, w2, b2 = init_params(kp, input_dim, hidden_dim)

    fwd = jax.jit(discriminator_forward)
    out = fwd(x, w1, b1, w2, b2)
    jax.block_until_ready(out)

    # Pure-JAX reference with matching bf16 MXU operands, f32 epilogue.
    xb = x.astype(jnp.bfloat16).astype(jnp.float32)
    w1b = w1.astype(jnp.bfloat16).astype(jnp.float32)
    h_ref = xb @ w1b + b1
    h_ref = jnp.maximum(h_ref, 0.2 * h_ref)
    ref = jax.nn.sigmoid(h_ref @ w2 + b2)

    assert out.shape == (batch, 1)
    assert jnp.allclose(out, ref, atol=1e-3, rtol=1e-3), (out, ref)
    print("KERNEL_OK")
</pallas_src>

<mosaic_0001>
module attributes {stable_mosaic.version = 11 : i64} {
  func.func @_discriminator_kernel(%arg0: i32, %arg1: memref<8x16xf32, #tpu.memory_space<vmem>>, %arg2: memref<16x256xbf16, #tpu.memory_space<vmem>>, %arg3: memref<1x256xf32, #tpu.memory_space<vmem>>, %arg4: memref<1x256xf32, #tpu.memory_space<vmem>>, %arg5: memref<1xf32, #tpu.memory_space<smem>>, %arg6: memref<8x1xf32, #tpu.memory_space<vmem>>) attributes {dimension_semantics = [#tpu.dimension_semantics<parallel>], iteration_bounds = array<i64: 1>, scalar_prefetch = 0 : i64, scratch_operands = 0 : i64, tpu.core_type = #tpu.core_type<tc>, window_params = [{transform_indices = @transform_0, window_bounds = array<i64: 8, 16>}, {pipeline_mode = #tpu.pipeline_mode<synchronous>, transform_indices = @transform_1, window_bounds = array<i64: 16, 256>}, {pipeline_mode = #tpu.pipeline_mode<synchronous>, transform_indices = @transform_2, window_bounds = array<i64: 1, 256>}, {pipeline_mode = #tpu.pipeline_mode<synchronous>, transform_indices = @transform_3, window_bounds = array<i64: 1, 256>}, {transform_indices = @transform_4, window_bounds = array<i64: 1>}, {transform_indices = @transform_5, window_bounds = array<i64: 8, 1>}]} {
    %c0 = arith.constant 0 : index
    %c0_0 = arith.constant 0 : index
    %0 = vector.load %arg1[%c0, %c0_0] : memref<8x16xf32, #tpu.memory_space<vmem>>, vector<8x16xf32>
    %1 = arith.truncf %0 : vector<8x16xf32> to vector<8x16xbf16>
    %c0_1 = arith.constant 0 : index
    %c0_2 = arith.constant 0 : index
    %2 = vector.load %arg2[%c0_1, %c0_2] : memref<16x256xbf16, #tpu.memory_space<vmem>>, vector<16x256xbf16>
    %cst = arith.constant dense<0.000000e+00> : vector<8x256xf32>
    %3 = tpu.matmul %1, %2, %cst {dimension_numbers = #tpu.dot_dimension_numbers<[1], [0], [0], [1], [0, 0, 1, 1], [], []>} : vector<8x16xbf16>, vector<16x256xbf16>, vector<8x256xf32> -> vector<8x256xf32>
    %c0_3 = arith.constant 0 : index
    %c0_4 = arith.constant 0 : index
    %4 = vector.load %arg3[%c0_3, %c0_4] : memref<1x256xf32, #tpu.memory_space<vmem>>, vector<1x256xf32>
    %5 = vector.broadcast %4 : vector<1x256xf32> to vector<8x256xf32>
    %6 = arith.addf %3, %5 : vector<8x256xf32>
    %cst_5 = arith.constant 2.000000e-01 : f32
    %7 = vector.broadcast %cst_5 : f32 to vector<8x256xf32>
    %8 = arith.mulf %7, %6 : vector<8x256xf32>
    %9 = arith.maximumf %6, %8 : vector<8x256xf32>
    %c0_6 = arith.constant 0 : index
    %c0_7 = arith.constant 0 : index
    %10 = vector.load %arg4[%c0_6, %c0_7] : memref<1x256xf32, #tpu.memory_space<vmem>>, vector<1x256xf32>
    %11 = vector.broadcast %10 : vector<1x256xf32> to vector<8x256xf32>
    %12 = arith.mulf %9, %11 : vector<8x256xf32>
    %cst_8 = arith.constant dense<0.000000e+00> : vector<8xf32>
    %13 = vector.multi_reduction <add>, %12, %cst_8 [1] : vector<8x256xf32> to vector<8xf32>
    %14 = vector.shape_cast %13 : vector<8xf32> to vector<8x1xf32>
    %c0_9 = arith.constant 0 : index
    %15 = memref.load %arg5[%c0_9] : memref<1xf32, #tpu.memory_space<smem>>
    %16 = vector.broadcast %15 : f32 to vector<8x1xf32>
    %17 = arith.addf %14, %16 : vector<8x1xf32>
    %18 = arith.negf %17 : vector<8x1xf32>
    %19 = math.exp %18 : vector<8x1xf32>
    %cst_10 = arith.constant 1.000000e+00 : f32
    %20 = vector.broadcast %cst_10 : f32 to vector<8x1xf32>
    %21 = arith.addf %20, %19 : vector<8x1xf32>
    %22 = arith.divf %20, %21 : vector<8x1xf32>
    %c0_11 = arith.constant 0 : index
    %c0_12 = arith.constant 0 : index
    %23 = vector.load %arg6[%c0_11, %c0_12] : memref<8x1xf32, #tpu.memory_space<vmem>>, vector<8x1xf32>
    tpu.vector_store %arg6[%c0_11, %c0_12], %22 {strides = array<i32>} : memref<8x1xf32, #tpu.memory_space<vmem>>, vector<8x1xf32>,
    return
  }
  func.func @transform_0(%arg0: i32) -> (i32, i32) {
    %c0_i32 = arith.constant 0 : i32
    %c0_i32_0 = arith.constant 0 : i32
    return %arg0, %c0_i32 : i32, i32
  }
  func.func @transform_1(%arg0: i32) -> (i32, i32) {
    %c0_i32 = arith.constant 0 : i32
    %c0_i32_0 = arith.constant 0 : i32
    %c0_i32_1 = arith.constant 0 : i32
    return %c0_i32, %c0_i32_0 : i32, i32
  }
  func.func @transform_2(%arg0: i32) -> (i32, i32) {
    %c0_i32 = arith.constant 0 : i32
    %c0_i32_0 = arith.constant 0 : i32
    %c0_i32_1 = arith.constant 0 : i32
    return %c0_i32, %c0_i32_0 : i32, i32
  }
  func.func @transform_3(%arg0: i32) -> (i32, i32) {
    %c0_i32 = arith.constant 0 : i32
    %c0_i32_0 = arith.constant 0 : i32
    %c0_i32_1 = arith.constant 0 : i32
    return %c0_i32, %c0_i32_0 : i32, i32
  }
  func.func @transform_4(%arg0: i32) -> i32 {
    %c0_i32 = arith.constant 0 : i32
    %c0_i32_0 = arith.constant 0 : i32
    return %c0_i32 : i32
  }
  func.func @transform_5(%arg0: i32) -> (i32, i32) {
    %c0_i32 = arith.constant 0 : i32
    %c0_i32_0 = arith.constant 0 : i32
    return %arg0, %c0_i32 : i32, i32
  }
}

</mosaic_0001>

<bundles_post_ra>
// kernel: discriminator_forward.1
= control target key start
LH: loop header
LB: loop body
LE: loop exit
PB: predicated region body
PF: predicated region fallthrough
CT: control target
= control target key end

     0   :  { %v141_v1 = vmov 0   ;;  %vm48_vm0 = vcmask 130048   ;;  %v28_v5 = vlaneseq  ;;  %vm123_vm1 = vcmask 7168   ;;  %s193_s1 = inlined_call_operand.vmem [shape: bf16[16,256], index: 1, kind: input, shape index: {}]   ;;  %s194_s0 = inlined_call_operand.vmem [shape: f32[8,16], index: 0, kind: input, shape index: {}]   ;;  %s195_s2 = inlined_call_operand.vmem [shape: f32[1,256], index: 2, kind: input, shape index: {}]   ;;  %s196_s3 = inlined_call_operand.vmem [shape: f32[1,256], index: 3, kind: input, shape index: {}]   ;;  %s197_s4 = inlined_call_operand.<no memory space> [shape: f32[1], index: 4, kind: input, shape index: {}]   ;;  %s198_s5 = inlined_call_operand.vmem [shape: f32[8,1], index: 5, kind: output, shape index: {}]  }
   0x1   :  { %v134_v0 = vld [vmem:[%s193_s1 + $0x4] ss:$8 sps:$4 sm:$0xff]   ;;  %84 = vmatprep.mubr.bf16.mxu0 %v141_v1  ;;  %v136_v2 = vld [vmem:[%s193_s1] ss:$8 sps:$4 sm:$0xff]   ;;  %v115_v28 = vstv %s197_s4 }
   0x2   :  { %v22_v3 = vld [vmem:[%s194_s0] sm:$0xff]  ;;  %52 = vmatprep.subr.bf16.mxu0 %v134_v0  ;;  %v29_v6 = vshrl.u32 %v28_v5, 7 }
   0x3   :  { %v23_v4 = vpack.c.bf16 %v22_v3, %v22_v3  ;;  %53 = vmatpush1.bf16.msra.mxu0 %v136_v2  ;;  %v26_v8 = vld [vmem:[%s195_s2] sm:$0x3] }
   0x4   :  { %v30_v7 = vsub.s32 0, %v29_v6  ;;  %v34_v9 = vsub.s32 1, %v29_v6  ;;  %v97_v13 = vld [vmem:[%s196_s3] sm:$0x3] }
   0x6   :  { %131 = vmatmul.mubr.msk.bf16.vlgmr.msra.gmra.mrb[0].mxu0 %vm48_vm0, %v23_v4  ;;  %v31_v10 = vrot.slane %v26_v8, %v30_v7  ;;  %v35_v11 = vrot.slane %v26_v8, %v34_v9  ;;  %v102_v20 = vrot.slane %v97_v13, %v30_v7  ;;  %v106_v22 = vrot.slane %v97_v13, %v34_v9 }
  0xd9   :  { %v86_v12 = vpop.f32.mrb[0].mxu0 }
  0xda   :  { %v87_v14 = vadd.f32 %v86_v12, %v31_v10  ;;  %v88_v15 = vpop.f32.mrb[1].mxu0 }
  0xdb   :  { %v89_v16 = vadd.f32 %v88_v15, %v35_v11  ;;  %v90_v17 = vpop.f32.mrb[2].mxu0 }
  0xdc   :  { %v93_v18 = vmul.f32 0.2, %v87_v14  ;;  %v91_v19 = vpop.f32.mrb[3].mxu0 }
  0xdd   :  { %v94_v21 = vmul.f32 0.2, %v89_v16 }
  0xde   :  { %v95_v23 = vmax.f32 %v87_v14, %v93_v18 }
  0xdf   :  { %v96_v24 = vmax.f32 %v89_v16, %v94_v21 }
  0xe0   :  { %v109_v25 = vmul.f32 %v102_v20, %v95_v23 }
  0xe1   :  { %v110_v26 = vmul.f32 %v106_v22, %v96_v24 }
  0xe3   :  { %v111_v27 = vadd.f32 %v110_v26, %v109_v25 }
  0xe5   :  { %112 = vadd.xlane.f32.xlu0 %v111_v27 }
 0x172   :  { %v113_v29 = vpop.xlane.xlu0 %112 }
 0x173   :  { %v116_v30 = vadd.f32 %v115_v28, %v113_v29 }
 0x175   :  { %v132_v31 = vmul.f32 -1.442695, %v116_v30 }
 0x177   :  { %137 = vpow2.f32 %v132_v31 }
 0x181   :  { %v138_v32 = vpop.eup %137 }
 0x182   :  { %v120_v33 = vadd.f32 1.0, %v138_v32 }
 0x184   :  { %139 = vrcp.f32 %v120_v33 }
 0x18e   :  { %v140_v34 = vpop.eup %139 }
 0x18f   :  { %124 = vst.msk [vmem:[%s198_s5] sm:$0xff] %vm123_vm1, %v140_v34 }

</bundles_post_ra>
